<compile_context>
chip_gen: v6e
topology: v6e:2x2x1
jax: 0.10.0
libtpu: 0.0.40
codegen_flags: <defaults>
</compile_context>

<pallas_src>
import math

import jax
import jax.numpy as jnp
from jax.experimental import pallas as pl
from jax.experimental.pallas import tpu as pltpu


# ---------------------------------------------------------------------------
# Kernel A: fused QKV projection, outputs q/k/v in (B, H, T, hd) layout.
# ---------------------------------------------------------------------------
def _qkv_proj_kernel(x_ref, w_ref, b_ref, q_ref, k_ref, v_ref):
    x = x_ref[0]                                   # (TS, C)
    TS, C = x.shape
    H, hd = q_ref.shape[1], q_ref.shape[3]
    scale = 1.0 / math.sqrt(hd)

    # Single fused matmul: (TS, C) @ (C, 3C) + (1, 3C)
    qkv = jnp.dot(x, w_ref[...], preferred_element_type=jnp.float32) + b_ref[...]

    def to_heads(m):                               # (TS, C) -> (H, TS, hd)
        return jnp.transpose(m.reshape(TS, H, hd), (1, 0, 2))

    # Fold the attention scale into q (T*hd elems instead of T*T later).
    q_ref[0] = (to_heads(qkv[:, :C]) * scale).astype(q_ref.dtype)
    k_ref[0] = to_heads(qkv[:, C:2 * C]).astype(k_ref.dtype)
    v_ref[0] = to_heads(qkv[:, 2 * C:]).astype(v_ref.dtype)


# ---------------------------------------------------------------------------
# Kernel B: flash-style causal attention + fused output projection.
# grid = (B, num_q_tiles, num_kv_tiles); kv axis is the (arbitrary) reduction.
# ---------------------------------------------------------------------------
def _flash_attn_kernel(q_ref, k_ref, v_ref, wp_ref, bp_ref, o_ref,
                       m_ref, l_ref, acc_ref):
    qi = pl.program_id(1)
    ki = pl.program_id(2)

    @pl.when(ki == 0)
    def _init():
        m_ref[...] = jnp.full_like(m_ref, -1e30)
        l_ref[...] = jnp.zeros_like(l_ref)
        acc_ref[...] = jnp.zeros_like(acc_ref)

    # Causal tile skipping: KV tiles strictly above the diagonal contribute
    # nothing (q-tile size == kv-tile size, enforced in the wrapper).
    @pl.when(ki <= qi)
    def _compute():
        q = q_ref[0]                               # (H, TQ, hd), scale folded in
        k = k_ref[0]                               # (H, TK, hd)
        v = v_ref[0]                               # (H, TK, hd)
        _, TQ, _ = q.shape
        TK = k.shape[1]

        # Batched over heads; contraction on the last dims -> no explicit k.T.
        s = jnp.einsum('hqd,hkd->hqk', q, k,
                       preferred_element_type=jnp.float32)   # (H, TQ, TK)

        # Causal mask at global positions with a finite sentinel (-1e30):
        # safe under tiling (no -inf - -inf NaNs).
        qpos = qi * TQ + jax.lax.broadcasted_iota(jnp.int32, (TQ, TK), 0)
        kpos = ki * TK + jax.lax.broadcasted_iota(jnp.int32, (TQ, TK), 1)
        s = jnp.where((kpos <= qpos)[None, :, :], s, -1e30)

        # Online softmax update.
        m_prev = m_ref[...]                                    # (H, TQ, 1)
        m_new = jnp.maximum(m_prev, jnp.max(s, axis=-1, keepdims=True))
        alpha = jnp.exp(m_prev - m_new)
        p = jnp.exp(s - m_new)                                 # (H, TQ, TK)
        l_ref[...] = alpha * l_ref[...] + jnp.sum(p, axis=-1, keepdims=True)
        acc_ref[...] = alpha * acc_ref[...] + jnp.einsum(
            'hqk,hkd->hqd', p.astype(v.dtype), v,
            preferred_element_type=jnp.float32)
        m_ref[...] = m_new

    @pl.when(ki == pl.num_programs(2) - 1)
    def _finalize():
        H, TQ, hd = acc_ref.shape
        C = H * hd
        inv_l = pl.reciprocal(l_ref[...], approx=True)          # EUP slot
        y = acc_ref[...] * inv_l                                 # (H, TQ, hd)
        y = jnp.transpose(y, (1, 0, 2)).reshape(TQ, C)           # head merge
        wp = wp_ref[...]
        out = jnp.dot(y.astype(wp.dtype), wp,
                      preferred_element_type=jnp.float32) + bp_ref[...]
        o_ref[0] = out.astype(o_ref.dtype)


# ---------------------------------------------------------------------------
# Wrapper
# ---------------------------------------------------------------------------
def _pick_tile(T, target=128):
    """Largest tile <= target that divides T and is a multiple of 8 (else T)."""
    if T <= target or T % 8 != 0:
        return T
    for t in range(target, 0, -8):
        if T % t == 0:
            return t
    return T


def _default_vmem_limit():
    try:
        cap = pltpu.get_tpu_info().vmem_capacity_bytes
        return int(min(cap // 2, 96 * 1024 * 1024))
    except Exception:
        return 32 * 1024 * 1024


def causal_self_attention(x, params, n_head, *, seq_tile=None,
                          vmem_limit_bytes=None):
    """x: (B, T, C). params: {'wqkv':(C,3C), 'bqkv':(1,3C), 'wp':(C,C), 'bp':(1,C)}."""
    B, T, C = x.shape
    assert C % n_head == 0
    hd = C // n_head
    wqkv, bqkv = params["wqkv"], params["bqkv"]
    wp, bp = params["wp"], params["bp"]

    ts = seq_tile if seq_tile is not None else _pick_tile(T)
    assert T % ts == 0, "sequence tile must divide T"
    n_t = T // ts
    if vmem_limit_bytes is None:
        vmem_limit_bytes = _default_vmem_limit()

    qkv_struct = jax.ShapeDtypeStruct((B, n_head, T, hd), x.dtype)
    head_spec = pl.BlockSpec((1, n_head, ts, hd), lambda b, t: (b, 0, t, 0))

    # --- Kernel A: fused QKV projection ------------------------------------
    q, k, v = pl.pallas_call(
        _qkv_proj_kernel,
        out_shape=(qkv_struct, qkv_struct, qkv_struct),
        grid_spec=pltpu.PrefetchScalarGridSpec(
            num_scalar_prefetch=0,
            grid=(B, n_t),
            in_specs=[
                pl.BlockSpec((1, ts, C), lambda b, t: (b, t, 0)),     # x
                pl.BlockSpec((C, 3 * C), lambda b, t: (0, 0)),        # wqkv
                pl.BlockSpec((1, 3 * C), lambda b, t: (0, 0)),        # bqkv
            ],
            out_specs=(head_spec, head_spec, head_spec),
        ),
        compiler_params=pltpu.CompilerParams(
            dimension_semantics=("parallel", "parallel"),
            vmem_limit_bytes=vmem_limit_bytes),
    )(x, wqkv, bqkv)

    # --- Kernel B: flash attention + output projection ----------------------
    q_spec = pl.BlockSpec((1, n_head, ts, hd), lambda b, qi, ki: (b, 0, qi, 0))
    kv_spec = pl.BlockSpec((1, n_head, ts, hd), lambda b, qi, ki: (b, 0, ki, 0))

    out = pl.pallas_call(
        _flash_attn_kernel,
        out_shape=jax.ShapeDtypeStruct((B, T, C), x.dtype),
        grid_spec=pltpu.PrefetchScalarGridSpec(
            num_scalar_prefetch=0,
            grid=(B, n_t, n_t),
            in_specs=[
                q_spec,                                               # q
                kv_spec,                                              # k
                kv_spec,                                              # v
                pl.BlockSpec((C, C), lambda b, qi, ki: (0, 0)),       # wp
                pl.BlockSpec((1, C), lambda b, qi, ki: (0, 0)),       # bp
            ],
            out_specs=pl.BlockSpec((1, ts, C), lambda b, qi, ki: (b, qi, 0)),
            scratch_shapes=[
                pltpu.VMEM((n_head, ts, 1), jnp.float32),   # running max
                pltpu.VMEM((n_head, ts, 1), jnp.float32),   # running denom
                pltpu.VMEM((n_head, ts, hd), jnp.float32),  # accumulator
            ],
        ),
        compiler_params=pltpu.CompilerParams(
            dimension_semantics=("parallel", "parallel", "arbitrary"),
            vmem_limit_bytes=vmem_limit_bytes),
    )(q, k, v, wp, bp)
    return out


# ---------------------------------------------------------------------------
# Pure-JAX reference (mirrors the PyTorch forward, eval mode).
# ---------------------------------------------------------------------------
def _reference(x, params, n_head):
    B, T, C = x.shape
    hd = C // n_head
    qkv = x @ params["wqkv"] + params["bqkv"]
    q, k, v = qkv[..., :C], qkv[..., C:2 * C], qkv[..., 2 * C:]
    q = q.reshape(B, T, n_head, hd).transpose(0, 2, 1, 3)
    k = k.reshape(B, T, n_head, hd).transpose(0, 2, 1, 3)
    v = v.reshape(B, T, n_head, hd).transpose(0, 2, 1, 3)
    att = jnp.einsum("bhqd,bhkd->bhqk", q, k) / math.sqrt(hd)
    mask = jnp.tril(jnp.ones((T, T)))
    att = jnp.where(mask == 0, -jnp.inf, att)
    att = jax.nn.softmax(att, axis=-1)
    y = jnp.einsum("bhqk,bhkd->bhqd", att, v)
    y = y.transpose(0, 2, 1, 3).reshape(B, T, C)
    return y @ params["wp"] + params["bp"]


if __name__ == "__main__":
    # Config: block_size>=T, n_embd=32, n_head=4 -> head_dim=8.
    B, T, C, n_head = 2, 8, 32, 4

    key = jax.random.PRNGKey(0)
    keys = jax.random.split(key, 9)
    s = 0.02
    wq = jax.random.normal(keys[0], (C, C), jnp.float32) * s
    bq = jax.random.normal(keys[1], (1, C), jnp.float32) * s
    wk = jax.random.normal(keys[2], (C, C), jnp.float32) * s
    bk = jax.random.normal(keys[3], (1, C), jnp.float32) * s
    wv = jax.random.normal(keys[4], (C, C), jnp.float32) * s
    bv = jax.random.normal(keys[5], (1, C), jnp.float32) * s
    wp = jax.random.normal(keys[6], (C, C), jnp.float32) * s
    bp = jax.random.normal(keys[7], (1, C), jnp.float32) * s
    x = jax.random.normal(keys[8], (B, T, C), jnp.float32)

    params = {
        # Fused QKV storage: (C, 3C) weight, (1, 3C) bias.
        "wqkv": jnp.concatenate([wq, wk, wv], axis=1),
        "bqkv": jnp.concatenate([bq, bk, bv], axis=1),
        "wp": wp,
        "bp": bp,
    }

    out = causal_self_attention(x, params, n_head)
    out = jax.block_until_ready(out)

    ref = _reference(x, params, n_head)
    assert out.shape == (B, T, C)
    # Slightly relaxed tolerance for pl.reciprocal(approx=True) in softmax.
    assert jnp.allclose(out, ref, atol=2e-4, rtol=2e-3), "mismatch vs reference"

    print("KERNEL_OK")
</pallas_src>

<mosaic_0001>
module attributes {stable_mosaic.version = 11 : i64} {
  func.func @_qkv_proj_kernel(%arg0: i32, %arg1: i32, %arg2: memref<1x8x32xf32, #tpu.memory_space<vmem>>, %arg3: memref<32x96xf32, #tpu.memory_space<vmem>>, %arg4: memref<1x96xf32, #tpu.memory_space<vmem>>, %arg5: memref<1x4x8x8xf32, #tpu.memory_space<vmem>>, %arg6: memref<1x4x8x8xf32, #tpu.memory_space<vmem>>, %arg7: memref<1x4x8x8xf32, #tpu.memory_space<vmem>>) attributes {dimension_semantics = [#tpu.dimension_semantics<parallel>, #tpu.dimension_semantics<parallel>], iteration_bounds = array<i64: 2, 1>, scalar_prefetch = 0 : i64, scratch_operands = 0 : i64, tpu.core_type = #tpu.core_type<tc>, window_params = [{transform_indices = @transform_0, window_bounds = array<i64: 1, 8, 32>}, {pipeline_mode = #tpu.pipeline_mode<synchronous>, transform_indices = @transform_1, window_bounds = array<i64: 32, 96>}, {pipeline_mode = #tpu.pipeline_mode<synchronous>, transform_indices = @transform_2, window_bounds = array<i64: 1, 96>}, {transform_indices = @transform_3, window_bounds = array<i64: 1, 4, 8, 8>}, {transform_indices = @transform_4, window_bounds = array<i64: 1, 4, 8, 8>}, {transform_indices = @transform_5, window_bounds = array<i64: 1, 4, 8, 8>}]} {
    %c0 = arith.constant 0 : index
    %c0_0 = arith.constant 0 : index
    %c0_1 = arith.constant 0 : index
    %0 = vector.load %arg2[%c0, %c0_0, %c0_1] : memref<1x8x32xf32, #tpu.memory_space<vmem>>, vector<1x8x32xf32>
    %1 = vector.shape_cast %0 : vector<1x8x32xf32> to vector<8x32xf32>
    %c0_2 = arith.constant 0 : index
    %c0_3 = arith.constant 0 : index
    %2 = vector.load %arg3[%c0_2, %c0_3] : memref<32x96xf32, #tpu.memory_space<vmem>>, vector<32x96xf32>
    %cst = arith.constant dense<0.000000e+00> : vector<8x96xf32>
    %3 = tpu.matmul %1, %2, %cst {dimension_numbers = #tpu.dot_dimension_numbers<[1], [0], [0], [1], [0, 0, 1, 1], [], []>} : vector<8x32xf32>, vector<32x96xf32>, vector<8x96xf32> -> vector<8x96xf32>
    %c0_4 = arith.constant 0 : index
    %c0_5 = arith.constant 0 : index
    %4 = vector.load %arg4[%c0_4, %c0_5] : memref<1x96xf32, #tpu.memory_space<vmem>>, vector<1x96xf32>
    %5 = vector.broadcast %4 : vector<1x96xf32> to vector<8x96xf32>
    %6 = arith.addf %3, %5 : vector<8x96xf32>
    %7 = vector.extract_strided_slice %6 {offsets = [0, 0], sizes = [8, 32], strides = [1, 1]} : vector<8x96xf32> to vector<8x32xf32>
    %8 = vector.shape_cast %7 : vector<8x32xf32> to vector<8x4x8xf32>
    %9 = tpu.transpose %8, [1, 0, 2] : vector<8x4x8xf32> -> vector<4x8x8xf32>
    %cst_6 = arith.constant 0.353553385 : f32
    %10 = vector.broadcast %cst_6 : f32 to vector<4x8x8xf32>
    %11 = arith.mulf %9, %10 : vector<4x8x8xf32>
    %c0_7 = arith.constant 0 : index
    %c0_8 = arith.constant 0 : index
    %c0_9 = arith.constant 0 : index
    %c0_10 = arith.constant 0 : index
    %12 = vector.load %arg5[%c0_7, %c0_8, %c0_9, %c0_10] : memref<1x4x8x8xf32, #tpu.memory_space<vmem>>, vector<1x4x8x8xf32>
    %13 = vector.shape_cast %12 : vector<1x4x8x8xf32> to vector<4x8x8xf32>
    %14 = vector.shape_cast %11 : vector<4x8x8xf32> to vector<1x4x8x8xf32>
    tpu.vector_store %arg5[%c0_7, %c0_8, %c0_9, %c0_10], %14 {strides = array<i32>} : memref<1x4x8x8xf32, #tpu.memory_space<vmem>>, vector<1x4x8x8xf32>,
    %15 = vector.extract_strided_slice %6 {offsets = [0, 32], sizes = [8, 32], strides = [1, 1]} : vector<8x96xf32> to vector<8x32xf32>
    %16 = vector.shape_cast %15 : vector<8x32xf32> to vector<8x4x8xf32>
    %17 = tpu.transpose %16, [1, 0, 2] : vector<8x4x8xf32> -> vector<4x8x8xf32>
    %c0_11 = arith.constant 0 : index
    %c0_12 = arith.constant 0 : index
    %c0_13 = arith.constant 0 : index
    %c0_14 = arith.constant 0 : index
    %18 = vector.load %arg6[%c0_11, %c0_12, %c0_13, %c0_14] : memref<1x4x8x8xf32, #tpu.memory_space<vmem>>, vector<1x4x8x8xf32>
    %19 = vector.shape_cast %18 : vector<1x4x8x8xf32> to vector<4x8x8xf32>
    %20 = vector.shape_cast %17 : vector<4x8x8xf32> to vector<1x4x8x8xf32>
    tpu.vector_store %arg6[%c0_11, %c0_12, %c0_13, %c0_14], %20 {strides = array<i32>} : memref<1x4x8x8xf32, #tpu.memory_space<vmem>>, vector<1x4x8x8xf32>,
    %21 = vector.extract_strided_slice %6 {offsets = [0, 64], sizes = [8, 32], strides = [1, 1]} : vector<8x96xf32> to vector<8x32xf32>
    %22 = vector.shape_cast %21 : vector<8x32xf32> to vector<8x4x8xf32>
    %23 = tpu.transpose %22, [1, 0, 2] : vector<8x4x8xf32> -> vector<4x8x8xf32>
    %c0_15 = arith.constant 0 : index
    %c0_16 = arith.constant 0 : index
    %c0_17 = arith.constant 0 : index
    %c0_18 = arith.constant 0 : index
    %24 = vector.load %arg7[%c0_15, %c0_16, %c0_17, %c0_18] : memref<1x4x8x8xf32, #tpu.memory_space<vmem>>, vector<1x4x8x8xf32>
    %25 = vector.shape_cast %24 : vector<1x4x8x8xf32> to vector<4x8x8xf32>
    %26 = vector.shape_cast %23 : vector<4x8x8xf32> to vector<1x4x8x8xf32>
    tpu.vector_store %arg7[%c0_15, %c0_16, %c0_17, %c0_18], %26 {strides = array<i32>} : memref<1x4x8x8xf32, #tpu.memory_space<vmem>>, vector<1x4x8x8xf32>,
    return
  }
  func.func @transform_0(%arg0: i32, %arg1: i32) -> (i32, i32, i32) {
    %c0_i32 = arith.constant 0 : i32
    %c0_i32_0 = arith.constant 0 : i32
    return %arg0, %arg1, %c0_i32 : i32, i32, i32
  }
  func.func @transform_1(%arg0: i32, %arg1: i32) -> (i32, i32) {
    %c0_i32 = arith.constant 0 : i32
    %c0_i32_0 = arith.constant 0 : i32
    %c0_i32_1 = arith.constant 0 : i32
    return %c0_i32, %c0_i32_0 : i32, i32
  }
  func.func @transform_2(%arg0: i32, %arg1: i32) -> (i32, i32) {
    %c0_i32 = arith.constant 0 : i32
    %c0_i32_0 = arith.constant 0 : i32
    %c0_i32_1 = arith.constant 0 : i32
    return %c0_i32, %c0_i32_0 : i32, i32
  }
  func.func @transform_3(%arg0: i32, %arg1: i32) -> (i32, i32, i32, i32) {
    %c0_i32 = arith.constant 0 : i32
    %c0_i32_0 = arith.constant 0 : i32
    %c0_i32_1 = arith.constant 0 : i32
    return %arg0, %c0_i32, %arg1, %c0_i32_0 : i32, i32, i32, i32
  }
  func.func @transform_4(%arg0: i32, %arg1: i32) -> (i32, i32, i32, i32) {
    %c0_i32 = arith.constant 0 : i32
    %c0_i32_0 = arith.constant 0 : i32
    %c0_i32_1 = arith.constant 0 : i32
    return %arg0, %c0_i32, %arg1, %c0_i32_0 : i32, i32, i32, i32
  }
  func.func @transform_5(%arg0: i32, %arg1: i32) -> (i32, i32, i32, i32) {
    %c0_i32 = arith.constant 0 : i32
    %c0_i32_0 = arith.constant 0 : i32
    %c0_i32_1 = arith.constant 0 : i32
    return %arg0, %c0_i32, %arg1, %c0_i32_0 : i32, i32, i32, i32
  }
}

</mosaic_0001>

<bundles_post_ra>
// kernel: tpu_custom_call.1
= control target key start
LH: loop header
LB: loop body
LE: loop exit
PB: predicated region body
PF: predicated region fallthrough
CT: control target
= control target key end

     0   :  { %s1781_s0 = inlined_call_operand.hbm [shape: f32[2,8,32], index: 0, kind: input, shape index: {}]   ;;  %s1782_s1 = inlined_call_operand.hbm [shape: f32[32,96], index: 1, kind: input, shape index: {}]   ;;  %s1783_s2 = inlined_call_operand.vmem [shape: f32[1,96], index: 2, kind: input, shape index: {}]   ;;  %s1784_s3 = inlined_call_operand.hbm [shape: f32[2,4,8,8], index: 3, kind: output, shape index: {0}]   ;;  %s1785_s4 = inlined_call_operand.hbm [shape: f32[2,4,8,8], index: 4, kind: output, shape index: {1}]   ;;  %s1786_s5 = inlined_call_operand.hbm [shape: f32[2,4,8,8], index: 5, kind: output, shape index: {2}]  }
   0x1   :  { %1790 = sst [smem:[#allocation16_spill]] %s1782_s1 }
   0x2   :  { %11 = vsyncpa [#allocation3], 0 }
   0x3   :  { %13 = vsyncpa [#allocation3 + $0x1], 0 }
   0x4   :  { %14 = vsyncpa [#allocation6], 0 }
   0x5   :  { %15 = vsyncpa [#allocation4], 0 }
   0x6   :  { %17 = vsyncpa [#allocation4 + $0x1], 0 }
   0x7   :  { %18 = vsyncpa [#allocation9], 0 }
   0x8   :  { %20 = vsyncpa [#allocation9 + $0x1], 0  ;;  %s1448_s18 = smov 0   ;;  %s1450_s19 = smov 0  }
   0x9   :  { %s1452_s20 = smov 0   ;;  %s1454_s21 = smov 0  }
   0xa   :  { %s1456_s22 = smov 0   ;;  %s1458_s23 = smov 0  }
   0xb LB: > { %s1479_s24 = sadd.s32 4294967295, %s1398_s23   ;;  %s1787_s25 = sadd.s32 4294967294, %s1398_s23   ;;  %s1398_s23 = sphi %s1458_s23, %s26_s23   ;;  %s1394_s22 = sphi %s1456_s22, %s1811_s22   ;;  %s1390_s21 = sphi %s1454_s21, %s1810_s21   ;;  %s1386_s20 = sphi %s1452_s20, %s1809_s20   ;;  %s1382_s19 = sphi %s1450_s19, %s1808_s19   ;;  %s1378_s18 = sphi %s1448_s18, %s1807_s18  }
   0xc   : > { %p60_p0 = scmp.ne.s32.totalorder %s1382_s19, %s1378_s18  ;;  %p1789_p1 = scmp.eq.s32.totalorder %s1479_s24, 0 }
   0xd   : > { %p134_p3 = scmp.eq.s32.totalorder %s1787_s25, 1  ;;  %p1059_p5 = scmp.ge.s32.totalorder %s1398_s23, 1 }
   0xe   : > { %p1490_p4 = por %p1789_p1, %p60_p0  ;;  %p197_p7 = scmp.lt.s32.totalorder %s1398_s23, 3 }
   0xf   : > { %p1495_p6 = por %p134_p3, %p60_p0  ;;  %s1400_s29 = smov [#allocation5]  }
  0x10   : > { %p1500_p8 = pnand %p1059_p5, %p197_p7  ;;  %s209_s30 = sshll.u32 %s1400_s29, 4  ;;  %s210_s30 = int_to_ptr.vmem [resolvable:$true] %s209_s30 }
  0x11   : > { %s1792_s27 = scalar_select %p1495_p6, 1, 0 }
  0x12   : > { %p1120_p9 = pneg %p1500_p8  ;;  %s38_s7 = sadd.s32 1, %s1394_s22 }
  0x13   : > { %s1215_s8 = scalar_lea.vmem %s210_s30, 512  ;;  %p1223_p5 = scmp.lt.s32.totalorder %s210_s30, %s210_s30 }
  0x14   : > { %p1509_p11 = pnand %p1120_p9, %p1789_p1  ;;  %p1216_p13 = scmp.ne.s32.totalorder %s210_s30, %s1215_s8 }
  0x15   : > { %p1224_p7 = scmp.lt.s32.totalorder %s1215_s8, %s1215_s8 }
  0x16   : > { %p1206_p12 = pneg %p1509_p11 }
  0x17   : > { %p1225_p2 = por %p1224_p7, %p1223_p5 }
  0x18   : > { %p1218_p0 = pnand %p1216_p13, %p1206_p12 }
  0x1a   : > { %p1219_p3 = pneg %p1218_p0 }
  0x1c   : > { %p1226_p6 = pnand %p1225_p2, %p1219_p3 }
  0x1e   : > { %1229 = shalt.err (!%p1226_p6)
}
  0x1f   : > { %s1401_s9 = smov 128   ;;  %s1402_s10 = smov 8  }
  0x20   : > { %s1795_s1 = sld [smem:[#allocation16_spill]]  ;;  %p40_p2 = scmp.ge.s32.totalorder %s38_s7, 2 }
  0x21   : > { %s47_s13 = sadd.s32 1, %s1386_s20  ;;  %p54_p6 = scmp.ne.s32.totalorder %s1386_s20, %s1382_s19 }
  0x22   : > { %p55_p9 = scmp.eq.s32.totalorder %s1398_s23, 0  ;;  %s1813_s7 = smov (%p40_p2, %s38_s7), 0 }
  0x23   : > { %1796 = sst [smem:[#allocation15_spill]] %s1813_s7  ;;  %p1798_p13 = scmp.eq.s32.totalorder %s1479_s24, 1 }
  0x24   : > { %p1527_p12 = por %p55_p9, %p54_p6  ;;  %s42_s16 = ssub.s32 %s1394_s22, %s1813_s7 }
  0x25   : > { %p1533_p0 = por %p1798_p13, %p54_p6  ;;  %p1139_p3 = scmp.lt.s32.totalorder %s1398_s23, 2 }
  0x26   : > { %1123 = dma.hbm_to_vmem [thread:$0]  (!%p1509_p11), %s1795_s1, 512, %s210_s30, [#allocation6], %s1401_s9, %s1401_s9, %s1402_s10  }
  0x27   : > { %p45_p11 = scmp.eq.s32.totalorder %s42_s16, 0  ;;  %s226_s17 = sand.u32 1, %s1386_s20  }
  0x28   : > { %s1062_s29 = sshll.u32 %s226_s17, 3  ;;  %s1063_s6 = sshll.u32 %s1394_s22, 7 }
  0x29   : > { %s1542_s30 = scalar_select %p45_p11, %s1386_s20, %s47_s13  }
  0x2a   : > { %s236_s10 = scalar_lea.hbm %s1781_s0, %s1063_s6  ;;  %s230_s11 = scalar_lea.vmem [#allocation2], %s1062_s29 }
  0x2b   : > { %s238_s12 = sshll.u32 %s230_s11, 4  ;;  %p1550_p5 = pnand %p1139_p3, %p1527_p12  ;;  %s239_s12 = int_to_ptr.vmem [resolvable:$true] %s238_s12 }
  0x2c   : > { %s227_s1 = scalar_lea.sflag [#allocation3], %s226_s17  ;;  %s1243_s16 = scalar_lea.vmem %s239_s12, 128 }
  0x2d   : > { %p1232_p7 = pneg %p1550_p5  ;;  %p1244_p2 = scmp.ne.s32.totalorder %s239_s12, %s1243_s16 }
  0x2e   : > { %s1403_s13 = smov [#allocation2]  }
  0x2f   : > { %p1246_p6 = pnand %p1244_p2, %p1232_p7  ;;  %s1248_s7 = sshll.u32 %s1403_s13, 4  ;;  %s1249_s7 = int_to_ptr.vmem [resolvable:$false] %s1248_s7 }
  0x30   : > { %s1250_s6 = scalar_lea.vmem %s1249_s7, 256  ;;  %p1251_p13 = scmp.lt.s32.totalorder %s239_s12, %s1249_s7 }
  0x31   : > { %p1247_p9 = pneg %p1246_p6  ;;  %p1252_p11 = scmp.lt.s32.totalorder %s1250_s6, %s1243_s16 }
  0x33   : > { %p1253_p10 = por %p1252_p11, %p1251_p13 }
  0x35   : > { %p1254_p1 = pnand %p1253_p10, %p1247_p9 }
  0x37   : > { %1257 = shalt.err (!%p1254_p1)
}
  0x38   : > { %1127 = dma.hbm_to_vmem [thread:$0]  (!%p1550_p5), %s236_s10, 128, %s239_s12, %s227_s1  }
  0x39   : > { %247 = sbr.rel (%p1500_p8) target bundleno = 560 (0x230), region = 32  ;;  %s1561_s14 = sand.u32 (!%p1500_p8), 1, %s1382_s19  }
  0x3a   : > { %s1065_s17 = sshll.u32 (!%p1500_p8), %s1561_s14, 3  ;;  %s250_s29 = scalar_lea.sflag (!%p1500_p8), [#allocation3], %s1561_s14 }
  0x3b   : > { %s253_s8 = scalar_lea.vmem (!%p1500_p8), [#allocation2], %s1065_s17 }
  0x3e   : > { %1361 = dma.done.wait (%p1490_p4), %s250_s29, 128  }
  0x3f   : > { %1363 = vsyncadd (%p1490_p4), %s250_s29, 4294967168  ;;  %p1801_p1 = scmp.eq.s32.totalorder %s1479_s24, 0 }
  0x41   : > { %1365 = dma.done.wait (%p1801_p1), [#allocation6], 512   ;;  %p1802_p10 = pmov %p1801_p1 }
  0x42   : > { %v1404_v0 = vmov 0.0   ;;  %vm1405_vm0 = vmmov 0   ;;  %v298_v1 = vld [vmem:[#allocation5 + $0x18] sm:$0xff]  ;;  %v297_v2 = vld [vmem:[#allocation5 + $0x10] sm:$0xff]  ;;  %v296_v3 = vld [vmem:[#allocation5 + $0x8] sm:$0xff]  ;;  %vm306_vm1 = vcmask 261120   ;;  %v395_v12 = vlaneseq }
  0x43   : > { %1367 = vsyncadd (%p1802_p10), [#allocation6], 4294966784  ;;  %1097 = vmatprep.subr.mxu0 %v1404_v0  ;;  %1105 = vmatprep.mubr.msk.f32.mxu0 %vm1405_vm0, %v1404_v0  ;;  %v295_v4 = vld [vmem:[#allocation5] sm:$0xff]  ;;  %v294_v5 = vld [vmem:[%s253_s8] sm:$0xff]  ;;  %s1406_s26 = smov 104   ;;  %s1407_s28 = smov 120  }
  0x44   : > { %1098 = vmatpush3.msra.mxu0 %v298_v1  ;;  %v1070_v6 = vld [vmem:[%s1783_s2] ss:$0 sm:$0xff]  ;;  %s1408_s7 = smov 96   ;;  %s1409_s9 = smov 112   ;;  %v1411_v10 = vmov 1983009808  }
  0x45   : > { %1099 = vmatprep.subr.mxu0 %v1404_v0  ;;  %s1410_s10 = smov 64   ;;  %v393_v11 = vunpack.c.l.s4 %v1411_v10  ;;  %v1412_v13 = vmov 1934713408   ;;  %v396_v16 = vshrl.u32 %v395_v12, 7  ;;  %s1597_s11 = sshll.u32 %s1561_s14, 5  ;;  %vm530_vm2 = vcmask 64512  }
  0x46   : > { %1100 = vmatpush3.msra.mxu0 %v297_v2  ;;  %v425_v14 = vunpack.c.l.s4 %v1412_v13  ;;  %s1604_s12 = sshll.u32 %s1390_s21, 9  ;;  %s279_s16 = scalar_lea.vmem [#allocation7], %s1597_s11 }
  0x47   : > { %1101 = vmatprep.subr.mxu0 %v1404_v0  ;;  %v394_v15 = vunpack.c.0.s8 %v393_v11  ;;  %s864_s13 = sshll.u32 %s279_s16, 4  ;;  %s1611_s29 = scalar_lea.hbm %s1784_s3, %s1604_s12  ;;  %s1613_s13 = int_to_ptr.vmem [resolvable:$true] %s864_s13 }
  0x48   : > { %1102 = vmatpush3.msra.mxu0 %v296_v3  ;;  %v426_v19 = vunpack.c.0.s8 %v425_v14  ;;  %s840_s21 = scalar_lea.sflag [#allocation4], %s1561_s14  ;;  %s1258_s8 = scalar_lea.vmem %s1613_s13, 512 }
  0x49   : > { %1103 = vmatprep.subr.mxu0 %v1404_v0  ;;  %v1577_v20 = vsub.s32 %v394_v15, %v396_v16  ;;  %p1259_p4 = scmp.ne.s32.totalorder %s1613_s13, %s1258_s8  ;;  %s1413_s1 = smov [#allocation7]  }
  0x4a   : > { %1104 = vmatpush3.msra.mxu0 %v295_v4  ;;  %v1579_v26 = vsub.s32 %v426_v19, %v396_v16  ;;  %s1262_s25 = sshll.u32 %s1413_s1, 4  ;;  %s1263_s25 = int_to_ptr.vmem [resolvable:$false] %s1262_s25 }
  0x4b   : > { %1106 = vmatmul.mubr.msk.f32.vlgmr.msra.gmra.mxu0 %vm306_vm1, %v294_v5  ;;  %p1260_p8 = pnand %p1259_p4, %p1533_p0  ;;  %p1265_p3 = scmp.lt.s32.totalorder %s1613_s13, %s1263_s25 }
  0x4d   : > { %p1261_p12 = pneg %p1260_p8 }
 0x10b   : > { %v376_v7 = vpop.f32.mrf.mxu0 }
 0x10c   : > { %v377_v8 = vadd.f32 %v1070_v6, %v376_v7 }
 0x10d   : > { %v1107_v9 = vpop.f32.mrf.mxu0 }
 0x10e   : > { %387 = vrot.lane.b32.xlu1 %v377_v8, %s1406_s26  ;;  %381 = vrot.lane.b32.xlu0 %v377_v8, %s1407_s28  ;;  %s1264_s26 = scalar_lea.vmem %s1263_s25, 1024 }
 0x10f   : > { %p1266_p5 = scmp.lt.s32.totalorder %s1264_s26, %s1258_s8 }
 0x111   : > { %p1267_p7 = por %p1266_p5, %p1265_p3 }
 0x112   : > { %535 = vrot.lane.b32.xlu1 %v377_v8, %s1408_s7  ;;  %384 = vrot.lane.b32.xlu0 %v377_v8, %s1409_s9 }
 0x113   : > { %p1268_p2 = pnand %p1267_p7, %p1261_p12 }
 0x116   : > { %687 = vrot.lane.b32.xlu1 %v377_v8, %s1410_s10 }
 0x180   : > { %v388_v17 = vpop.permute.xlu1 %387  ;;  %v382_v18 = vpop.permute.xlu0 %381 }
 0x181   : > { %537 = vrot.lane.b32.xlu0 %v382_v18, %s1408_s7  ;;  %v406_v21 = vcombine.low %v382_v18, %v388_v17  ;;  %v407_v22 = vcombine.high %v382_v18, %v388_v17 }
 0x183   : > { %v414_v27 = vrot.slane %v406_v21, %v1577_v20  ;;  %v421_v28 = vrot.slane %v407_v22, %v1577_v20 }
 0x184   : > { %v385_v23 = vpop.permute.xlu0 %384 }
 0x185   : > { %v390_v24 = vcombine.low %v377_v8, %v385_v23  ;;  %v391_v25 = vcombine.high %v377_v8, %v385_v23  ;;  %541 = vrot.lane.b32.xlu0 %v388_v17, %s1408_s7  ;;  %539 = vrot.lane.b32.xlu1 %v385_v23, %s1408_s7 }
 0x187   : > { %v398_v29 = vrot.slane %v390_v24, %v1577_v20  ;;  %v405_v30 = vrot.slane %v391_v25, %v1577_v20 }
 0x189   : > { %v422_v31 = vcombine.low %v398_v29, %v414_v27  ;;  %v423_v32 = vcombine.high %v398_v29, %v414_v27  ;;  %v438_v33 = vcombine.low %v405_v30, %v421_v28  ;;  %v439_v34 = vcombine.high %v405_v30, %v421_v28  ;;  %689 = vrot.lane.b32.xlu0 %v382_v18, %s1410_s10 }
 0x18a   : > { %691 = vrot.lane.b32.xlu1 %v385_v23, %s1410_s10 }
 0x18b   : > { %v430_v35 = vrot.slane %v422_v31, %v1579_v26  ;;  %v437_v36 = vrot.slane %v423_v32, %v1579_v26  ;;  %v446_v37 = vrot.slane %v438_v33, %v1579_v26  ;;  %v453_v38 = vrot.slane %v439_v34, %v1579_v26 }
 0x18d   : > { %v458_v39 = vcombine.low %v430_v35, %v437_v36  ;;  %v1072_v40 = vcombine.high %v430_v35, %v437_v36  ;;  %v474_v41 = vcombine.low %v446_v37, %v453_v38  ;;  %v1073_v42 = vcombine.high %v446_v37, %v453_v38  ;;  %693 = vrot.lane.b32.xlu0 %v388_v17, %s1410_s10 }
 0x18f   : > { %v465_v43 = vrot.slane %v458_v39, %v1577_v20  ;;  %v473_v44 = vrot.slane %v1072_v40, %v1577_v20  ;;  %v481_v45 = vrot.slane %v474_v41, %v1577_v20  ;;  %v489_v46 = vrot.slane %v1073_v42, %v1577_v20 }
 0x191   : > { %v490_v47 = vcombine.low %v465_v43, %v473_v44  ;;  %v491_v48 = vcombine.high %v465_v43, %v473_v44  ;;  %v506_v49 = vcombine.low %v481_v45, %v489_v46  ;;  %v507_v50 = vcombine.high %v481_v45, %v489_v46 }
 0x193   : > { %v498_v51 = vrot.slane %v490_v47, %v1579_v26  ;;  %v505_v52 = vrot.slane %v491_v48, %v1579_v26  ;;  %v514_v53 = vrot.slane %v506_v49, %v1579_v26  ;;  %v521_v54 = vrot.slane %v507_v50, %v1579_v26 }
 0x195   : > { %v522_v55 = vcombine.low %v498_v51, %v514_v53  ;;  %v523_v56 = vcombine.high %v498_v51, %v514_v53  ;;  %v524_v57 = vcombine.low %v505_v52, %v521_v54  ;;  %v525_v58 = vcombine.high %v505_v52, %v521_v54 }
 0x197   : > { %v526_v59 = vmul.f32 0.35355338, %v522_v55  ;;  %v527_v60 = vmul.f32 0.35355338, %v523_v56  ;;  %v528_v61 = vmul.f32 0.35355338, %v524_v57 }
 0x198   : > { %v529_v62 = vmul.f32 0.35355338, %v525_v58 }
 0x199   : > { %531 = vst.msk [vmem:[%s279_s16] sm:$0xff] %vm530_vm2, %v526_v59  ;;  %532 = vst.msk [vmem:[%s279_s16 + $0x8] sm:$0xff] %vm530_vm2, %v527_v60 }
 0x19a   : > { %533 = vst.msk [vmem:[%s279_s16 + $0x10] sm:$0xff] %vm530_vm2, %v528_v61  ;;  %534 = vst.msk [vmem:[%s279_s16 + $0x18] sm:$0xff] %vm530_vm2, %v529_v62 }
 0x19b   : > { %1271 = shalt.err (!%p1268_p2)
}
 0x19c   : > { %s1272_s28 = scalar_lea.hbm %s1611_s29, 512  ;;  %s1276_s10 = scalar_lea.hbm %s1784_s3, 1024 }
 0x19d   : > { %p1273_p6 = scmp.ne.s32.totalorder %s1611_s29, %s1272_s28  ;;  %p1277_p11 = scmp.lt.s32.totalorder %s1611_s29, %s1784_s3 }
 0x19e   : > { %p1278_p1 = scmp.lt.s32.totalorder %s1276_s10, %s1272_s28 }
 0x19f   : > { %p1274_p9 = pnand %p1273_p6, %p1533_p0 }
 0x1a0   : > { %p1279_p10 = por %p1278_p1, %p1277_p11 }
 0x1a1   : > { %p1275_p13 = pneg %p1274_p9 }
 0x1a3   : > { %p1280_p4 = pnand %p1279_p10, %p1275_p13 }
 0x1a5   : > { %1283 = shalt.err (!%p1280_p4)
}
 0x1a6   : > { %s1414_s17 = smov 128   ;;  %s1415_s8 = smov 8   ;;  %v536_v63 = vpop.permute.xlu1 %535 }
 0x1a7   : > { %1114 = dma.vmem_to_hbm [thread:$0]  (%p1533_p0), %s1613_s13, 512, %s1611_s29, %s840_s21, %s1414_s17, %s1414_s17, %s1415_s8  }
 0x1a8   : > { %s844_s14 = sand.u32 1, %s1479_s24   ;;  %s286_s13 = scalar_lea.vmem [#allocation8], %s1597_s11 }
 0x1a9   : > { %s881_s29 = sshll.u32 %s286_s13, 4  ;;  %s1675_s25 = scalar_lea.hbm %s1785_s4, %s1604_s12  ;;  %s1677_s29 = int_to_ptr.vmem [resolvable:$true] %s881_s29 }
 0x1aa   : > { %v688_v0 = vpop.permute.xlu1 %687  ;;  %s1689_s26 = scalar_lea.sflag [#allocation9], %s844_s14  ;;  %s1284_s28 = scalar_lea.vmem %s1677_s29, 512 }
 0x1ab   : > { %p1285_p8 = scmp.ne.s32.totalorder %s1677_s29, %s1284_s28  ;;  %s1416_s7 = smov [#allocation8]  }
 0x1ac   : > { %s1288_s9 = sshll.u32 %s1416_s7, 4  ;;  %s1289_s9 = int_to_ptr.vmem [resolvable:$false] %s1288_s9 }
 0x1ad   : > { %p1286_p12 = pnand %p1285_p8, %p1533_p0  ;;  %s1290_s10 = scalar_lea.vmem %s1289_s9, 1024 }
 0x1ae   : > { %p1291_p5 = scmp.lt.s32.totalorder %s1677_s29, %s1289_s9  ;;  %p1292_p7 = scmp.lt.s32.totalorder %s1290_s10, %s1284_s28 }
 0x1af   : > { %p1287_p3 = pneg %p1286_p12 }
 0x1b0   : > { %p1293_p2 = por %p1292_p7, %p1291_p5 }
 0x1b2   : > { %p1294_p6 = pnand %p1293_p2, %p1287_p3 }
 0x1f3   : > { %v538_v1 = vpop.permute.xlu0 %537 }
 0x1f7   : > { %v540_v2 = vpop.permute.xlu1 %539  ;;  %v542_v3 = vpop.permute.xlu0 %541 }
 0x1f8   : > { %v547_v4 = vcombine.low %v536_v63, %v540_v2  ;;  %v548_v5 = vcombine.high %v536_v63, %v540_v2  ;;  %v563_v6 = vcombine.low %v538_v1, %v542_v3  ;;  %v564_v7 = vcombine.high %v538_v1, %v542_v3 }
 0x1fa   : > { %v555_v8 = vrot.slane %v547_v4, %v1577_v20  ;;  %v562_v9 = vrot.slane %v548_v5, %v1577_v20  ;;  %v571_v10 = vrot.slane %v563_v6, %v1577_v20  ;;  %v578_v11 = vrot.slane %v564_v7, %v1577_v20 }
 0x1fb   : > { %v690_v12 = vpop.permute.xlu0 %689 }
 0x1fc   : > { %v579_v13 = vcombine.low %v555_v8, %v571_v10  ;;  %v580_v14 = vcombine.high %v555_v8, %v571_v10  ;;  %v595_v15 = vcombine.low %v562_v9, %v578_v11  ;;  %v596_v16 = vcombine.high %v562_v9, %v578_v11  ;;  %v692_v17 = vpop.permute.xlu1 %691 }
 0x1fd   : > { %v699_v23 = vcombine.low %v688_v0, %v692_v17  ;;  %v700_v24 = vcombine.high %v688_v0, %v692_v17 }
 0x1fe   : > { %v587_v18 = vrot.slane %v579_v13, %v1579_v26  ;;  %v594_v19 = vrot.slane %v580_v14, %v1579_v26  ;;  %v603_v21 = vrot.slane %v595_v15, %v1579_v26  ;;  %v610_v22 = vrot.slane %v596_v16, %v1579_v26 }
 0x1ff   : > { %v694_v25 = vpop.permute.xlu0 %693  ;;  %v707_v37 = vrot.slane %v699_v23, %v1577_v20  ;;  %v714_v38 = vrot.slane %v700_v24, %v1577_v20 }
 0x200   : > { %v615_v27 = vcombine.low %v587_v18, %v594_v19  ;;  %v1074_v28 = vcombine.high %v587_v18, %v594_v19  ;;  %v631_v29 = vcombine.low %v603_v21, %v610_v22  ;;  %v1075_v30 = vcombine.high %v603_v21, %v610_v22 }
 0x201   : > { %v715_v31 = vcombine.low %v690_v12, %v694_v25  ;;  %v716_v32 = vcombine.high %v690_v12, %v694_v25 }
 0x202   : > { %v622_v33 = vrot.slane %v615_v27, %v1577_v20  ;;  %v630_v34 = vrot.slane %v1074_v28, %v1577_v20  ;;  %v638_v35 = vrot.slane %v631_v29, %v1577_v20  ;;  %v646_v36 = vrot.slane %v1075_v30, %v1577_v20 }
 0x203   : > { %v723_v39 = vrot.slane %v715_v31, %v1577_v20  ;;  %v730_v40 = vrot.slane %v716_v32, %v1577_v20 }
 0x204   : > { %v647_v41 = vcombine.low %v622_v33, %v630_v34  ;;  %v648_v42 = vcombine.high %v622_v33, %v630_v34  ;;  %v663_v43 = vcombine.low %v638_v35, %v646_v36  ;;  %v664_v44 = vcombine.high %v638_v35, %v646_v36 }
 0x205   : > { %v731_v45 = vcombine.low %v707_v37, %v723_v39  ;;  %v732_v46 = vcombine.high %v707_v37, %v723_v39  ;;  %v747_v47 = vcombine.low %v714_v38, %v730_v40  ;;  %v748_v48 = vcombine.high %v714_v38, %v730_v40 }
 0x206   : > { %v655_v49 = vrot.slane %v647_v41, %v1579_v26  ;;  %v662_v50 = vrot.slane %v648_v42, %v1579_v26  ;;  %v671_v51 = vrot.slane %v663_v43, %v1579_v26  ;;  %v678_v52 = vrot.slane %v664_v44, %v1579_v26 }
 0x207   : > { %v739_v53 = vrot.slane %v731_v45, %v1579_v26  ;;  %v746_v54 = vrot.slane %v732_v46, %v1579_v26  ;;  %v755_v55 = vrot.slane %v747_v47, %v1579_v26  ;;  %v762_v56 = vrot.slane %v748_v48, %v1579_v26 }
 0x208   : > { %v679_v57 = vcombine.low %v655_v49, %v671_v51  ;;  %v680_v58 = vcombine.high %v655_v49, %v671_v51  ;;  %v681_v59 = vcombine.low %v662_v50, %v678_v52  ;;  %v682_v60 = vcombine.high %v662_v50, %v678_v52 }
 0x209   : > { %v767_v61 = vcombine.low %v739_v53, %v746_v54  ;;  %v1076_v62 = vcombine.high %v739_v53, %v746_v54  ;;  %v783_v63 = vcombine.low %v755_v55, %v762_v56  ;;  %v1077_v0 = vcombine.high %v755_v55, %v762_v56 }
 0x20a   : > { %683 = vst.msk [vmem:[%s286_s13] sm:$0xff] %vm530_vm2, %v679_v57  ;;  %684 = vst.msk [vmem:[%s286_s13 + $0x8] sm:$0xff] %vm530_vm2, %v680_v58 }
 0x20b   : > { %685 = vst.msk [vmem:[%s286_s13 + $0x10] sm:$0xff] %vm530_vm2, %v681_v59  ;;  %686 = vst.msk [vmem:[%s286_s13 + $0x18] sm:$0xff] %vm530_vm2, %v682_v60  ;;  %v774_v1 = vrot.slane %v767_v61, %v1577_v20  ;;  %v782_v2 = vrot.slane %v1076_v62, %v1577_v20  ;;  %v790_v3 = vrot.slane %v783_v63, %v1577_v20 }
 0x20c   : > { %v798_v4 = vrot.slane %v1077_v0, %v1577_v20 }
 0x20d   : > { %1297 = shalt.err (!%p1294_p6)
}
 0x20e   : > { %s1298_s24 = scalar_lea.hbm %s1675_s25, 512  ;;  %s1302_s14 = scalar_lea.hbm %s1785_s4, 1024 }
 0x20f   : > { %p1299_p9 = scmp.ne.s32.totalorder %s1675_s25, %s1298_s24  ;;  %p1303_p1 = scmp.lt.s32.totalorder %s1675_s25, %s1785_s4 }
 0x210   : > { %p1304_p10 = scmp.lt.s32.totalorder %s1302_s14, %s1298_s24 }
 0x211   : > { %p1300_p13 = pnand %p1299_p9, %p1533_p0 }
 0x212   : > { %p1305_p4 = por %p1304_p10, %p1303_p1 }
 0x213   : > { %p1301_p11 = pneg %p1300_p13 }
 0x215   : > { %p1306_p8 = pnand %p1305_p4, %p1301_p11 }
 0x217   : > { %1309 = shalt.err (!%p1306_p8)
}
 0x218   : > { %1115 = dma.vmem_to_hbm [thread:$0]  (%p1533_p0), %s1677_s29, 512, %s1675_s25, %s1689_s26, %s1414_s17, %s1414_s17, %s1415_s8   ;;  %v799_v20 = vcombine.low %v774_v1, %v782_v2  ;;  %v800_v5 = vcombine.high %v774_v1, %v782_v2  ;;  %v815_v6 = vcombine.low %v790_v3, %v798_v4  ;;  %v816_v7 = vcombine.high %v790_v3, %v798_v4 }
 0x219   : > { %s293_s1 = scalar_lea.vmem [#allocation10], %s1597_s11  ;;  %s1724_s7 = scalar_lea.hbm %s1786_s5, %s1604_s12 }
 0x21a   : > { %s898_s28 = sshll.u32 %s293_s1, 4  ;;  %v807_v8 = vrot.slane %v799_v20, %v1579_v26  ;;  %v814_v9 = vrot.slane %v800_v5, %v1579_v26  ;;  %v823_v10 = vrot.slane %v815_v6, %v1579_v26  ;;  %v830_v11 = vrot.slane %v816_v7, %v1579_v26  ;;  %s1417_s12 = smov [#allocation10]   ;;  %s1726_s28 = int_to_ptr.vmem [resolvable:$true] %s898_s28 }
 0x21b   : > { %s1310_s11 = scalar_lea.vmem %s1726_s28, 512  ;;  %s1314_s9 = sshll.u32 %s1417_s12, 4  ;;  %s1315_s9 = int_to_ptr.vmem [resolvable:$false] %s1314_s9 }
 0x21c   : > { %v831_v12 = vcombine.low %v807_v8, %v823_v10  ;;  %v832_v13 = vcombine.high %v807_v8, %v823_v10  ;;  %v833_v14 = vcombine.low %v814_v9, %v830_v11  ;;  %v834_v15 = vcombine.high %v814_v9, %v830_v11  ;;  %p1311_p12 = scmp.ne.s32.totalorder %s1726_s28, %s1310_s11  ;;  %s1316_s10 = scalar_lea.vmem %s1315_s9, 1024 }
 0x21d   : > { %p1317_p7 = scmp.lt.s32.totalorder %s1726_s28, %s1315_s9  ;;  %p1318_p2 = scmp.lt.s32.totalorder %s1316_s10, %s1310_s11 }
 0x21e   : > { %835 = vst.msk [vmem:[%s293_s1] sm:$0xff] %vm530_vm2, %v831_v12  ;;  %836 = vst.msk [vmem:[%s293_s1 + $0x8] sm:$0xff] %vm530_vm2, %v832_v13  ;;  %p1312_p3 = pnand %p1311_p12, %p1533_p0 }
 0x21f   : > { %837 = vst.msk [vmem:[%s293_s1 + $0x10] sm:$0xff] %vm530_vm2, %v833_v14  ;;  %838 = vst.msk [vmem:[%s293_s1 + $0x18] sm:$0xff] %vm530_vm2, %v834_v15  ;;  %p1319_p6 = por %p1318_p2, %p1317_p7 }
 0x220   : > { %p1313_p5 = pneg %p1312_p3 }
 0x222   : > { %p1320_p9 = pnand %p1319_p6, %p1313_p5 }
 0x224   : > { %1323 = shalt.err (!%p1320_p9)
}
 0x225   : > { %s1324_s24 = scalar_lea.hbm %s1724_s7, 512  ;;  %s1328_s14 = scalar_lea.hbm %s1786_s5, 1024 }
 0x226   : > { %p1325_p13 = scmp.ne.s32.totalorder %s1724_s7, %s1324_s24  ;;  %p1329_p10 = scmp.lt.s32.totalorder %s1724_s7, %s1786_s5 }
 0x227   : > { %p1330_p4 = scmp.lt.s32.totalorder %s1328_s14, %s1324_s24 }
 0x228   : > { %p1326_p11 = pnand %p1325_p13, %p1533_p0 }
 0x229   : > { %p1331_p8 = por %p1330_p4, %p1329_p10 }
 0x22a   : > { %p1327_p1 = pneg %p1326_p11 }
 0x22c   : > { %p1332_p12 = pnand %p1331_p8, %p1327_p1 }
 0x22e   : > { %1335 = shalt.err (!%p1332_p12)
}
 0x22f   : > { %1116 = dma.vmem_to_hbm [thread:$0]  (%p1533_p0), %s1726_s28, 512, %s1724_s7, %s1689_s26, %s1414_s17, %s1414_s17, %s1415_s8  }
 0x230 PF: > { %s913_s1 = sand.u32 1, %s1378_s18   ;;  %p1803_p3 = scmp.ne.s32.totalorder %s1792_s27, 0 }
 0x231   : > { %p1804_p5 = scmp.ge.s32.totalorder %s1398_s23, 2  ;;  %s914_s29 = scalar_lea.sflag [#allocation4], %s913_s1 }
 0x233   : > { %p1129_p7 = pnand %p1804_p5, %p1803_p3 }
 0x235   : > { %p1130_p2 = pneg %p1129_p7 }
 0x237   : > { %1369 = dma.done.wait (%p1130_p2), %s914_s29, 512  }
 0x238   : > { %1371 = vsyncadd (%p1130_p2), %s914_s29, 4294966784  ;;  %s1805_s15 = sadd.s32 4294967294, %s1398_s23  }
 0x239   : > { %s922_s25 = sand.u32 1, %s1805_s15  }
 0x23a   : > { %s923_s11 = scalar_lea.sflag [#allocation9], %s922_s25 }
 0x23b   : > { %1373 = dma.done.wait (%p1130_p2), %s923_s11, 1024  }
 0x23c   : > { %1375 = vsyncadd (%p1130_p2), %s923_s11, 4294966272  ;;  %s26_s23 = sadd.s32 1, %s1398_s23   ;;  %s1806_s27 = sld [smem:[#allocation15_spill]] }
 0x23d   : > { %p23_p0 = scmp.ge.s32.totalorder %s26_s23, 4   ;;  %s1807_s18 = smov %s1382_s19 }
 0x23e   : > { %s1808_s19 = smov %s1386_s20  ;;  %s1809_s20 = smov %s1542_s30 }
 0x23f   : > { %s1810_s21 = smov %s1394_s22  ;;  %25 = sbr.rel (!%p23_p0) target bundleno = 11 (0xb), region = 113 }
 0x242   : > { %s1811_s22 = smov %s1806_s27 }
 0x244   :  { %937 = vsyncpa [#allocation3], 1 }
 0x245   :  { %939 = vsyncpa [#allocation3 + $0x1], 1 }
 0x246   :  { %940 = vsyncpa [#allocation6], 1 }
 0x247   :  { %941 = vsyncpa [#allocation4], 1 }
 0x248   :  { %943 = vsyncpa [#allocation4 + $0x1], 1 }
 0x249   :  { %944 = vsyncpa [#allocation9], 1 }
 0x24a   :  { %946 = vsyncpa [#allocation9 + $0x1], 1 }

</bundles_post_ra>
